<compile_context>
chip_gen: v7x
topology: tpu7x:2x2x1
jax: 0.10.0
libtpu: 0.0.40
codegen_flags: <defaults>
</compile_context>

<pallas_src>
import functools

import jax
import jax.numpy as jnp
from jax.experimental import pallas as pl
from jax.experimental.pallas import tpu as pltpu


def _lstm_cell_kernel(xh_ref, c_ref, w_ref, b_ref, c_out_ref, h_out_ref):
    """One (batch-tile, hidden-tile) block of the LSTM cell update.

    xh_ref : (tb, E+H)     fused [x | h] activations (f32 or bf16)
    c_ref  : (tb, tn)      previous cell state (f32)
    w_ref  : (4, E+H, tn)  gate-major fused weights [U ; W] (f32 or bf16)
    b_ref  : (4, 1, tn)    folded biases BU + BW (f32)
    Gate order along the leading weight dim matches torch.chunk(4, dim=1):
    f, i, c_new, o.
    """
    xh = xh_ref[...]
    c = c_ref[...]

    def gate_pre(g):
        # Fused-K MXU matmul per gate; each output is a full-lane (tb, tn) tile.
        return (jnp.dot(xh, w_ref[g], preferred_element_type=jnp.float32)
                + b_ref[g])

    def sigmoid(x):
        # tanh-form sigmoid: one EUP op instead of exp + reciprocal.
        return 0.5 * jnp.tanh(0.5 * x) + 0.5

    f = sigmoid(gate_pre(0))
    i = sigmoid(gate_pre(1))
    c_new = jnp.tanh(gate_pre(2))
    o = sigmoid(gate_pre(3))

    c_next = c * f + i * c_new
    c_out_ref[...] = c_next.astype(c_out_ref.dtype)
    h_out_ref[...] = (o * jnp.tanh(c_next)).astype(h_out_ref.dtype)


def _round_up(x, m):
    return ((x + m - 1) // m) * m


@functools.partial(jax.jit, static_argnames=("block_h", "block_b", "mxu_dtype"))
def lstm_cell(inp, cell_state, hidden_state,
              U_input, BU_input, W_hidden, BW_hidden,
              *, block_h=512, block_b=None, mxu_dtype=jnp.float32):
    """One LSTM cell step. Returns (cell_state_new, hidden_state_new)."""
    B, E = inp.shape
    _, H = cell_state.shape
    EH = E + H
    H_pad = _round_up(H, 128)                 # lane-dense hidden axis

    # --- layout plumbing (wrapper only, outside the kernel) -----------------
    xh = jnp.concatenate([inp, hidden_state], axis=1)            # (B, E+H)
    w = jnp.concatenate([U_input, W_hidden], axis=0)             # (E+H, 4H)
    b = BU_input + BW_hidden                                     # (4H,)

    # Gate-major layout (gate order f, i, c_new, o), padded to H_pad lanes.
    w = jnp.transpose(w.reshape(EH, 4, H), (1, 0, 2))            # (4, E+H, H)
    w = jnp.pad(w, ((0, 0), (0, 0), (0, H_pad - H)))             # (4, E+H, Hp)
    b = jnp.pad(b.reshape(4, H), ((0, 0), (0, H_pad - H)))
    b = b.reshape(4, 1, H_pad).astype(jnp.float32)               # (4, 1, Hp)
    c_pad = jnp.pad(cell_state.astype(jnp.float32),
                    ((0, 0), (0, H_pad - H)))                    # (B, Hp)

    # bf16 MXU operands (v6e/v7x fast path); accumulation & gate math stay f32.
    xh = xh.astype(mxu_dtype)
    w = w.astype(mxu_dtype)

    # --- tiling --------------------------------------------------------------
    tb = B if block_b is None else block_b
    assert B % tb == 0, "block_b must divide the batch size"
    n128 = H_pad // 128
    best = 1
    for t in range(1, n128 + 1):              # largest divisor of H_pad/128
        if n128 % t == 0 and t * 128 <= max(block_h, 128):
            best = t
    tn = best * 128
    grid = (B // tb, H_pad // tn)

    grid_spec = pltpu.PrefetchScalarGridSpec(
        num_scalar_prefetch=0,
        grid=grid,
        in_specs=[
            pl.BlockSpec((tb, EH), lambda bi, j: (bi, 0)),        # xh
            pl.BlockSpec((tb, tn), lambda bi, j: (bi, j)),        # cell state
            pl.BlockSpec((4, EH, tn), lambda bi, j: (0, 0, j)),   # fused weights
            pl.BlockSpec((4, 1, tn), lambda bi, j: (0, 0, j)),    # folded bias
        ],
        out_specs=(
            pl.BlockSpec((tb, tn), lambda bi, j: (bi, j)),        # c_next
            pl.BlockSpec((tb, tn), lambda bi, j: (bi, j)),        # h_next
        ),
    )

    c_out, h_out = pl.pallas_call(
        _lstm_cell_kernel,
        out_shape=(jax.ShapeDtypeStruct((B, H_pad), jnp.float32),
                   jax.ShapeDtypeStruct((B, H_pad), jnp.float32)),
        grid_spec=grid_spec,
        input_output_aliases={1: 0},          # donate cell-state buffer
        compiler_params=pltpu.CompilerParams(
            dimension_semantics=("parallel", "parallel"),
            vmem_limit_bytes=48 * 1024 * 1024),
    )(xh, c_pad, w, b)

    return c_out[:, :H], h_out[:, :H]


def reference_lstm_cell(inp, cell_state, hidden_state, U, BU, W, BW):
    gates = inp @ U + BU + hidden_state @ W + BW
    H = cell_state.shape[-1]
    f = jax.nn.sigmoid(gates[:, 0 * H:1 * H])
    i = jax.nn.sigmoid(gates[:, 1 * H:2 * H])
    c_new = jnp.tanh(gates[:, 2 * H:3 * H])
    o = jax.nn.sigmoid(gates[:, 3 * H:4 * H])
    c_next = cell_state * f + i * c_new
    h_next = o * jnp.tanh(c_next)
    return c_next, h_next


if __name__ == "__main__":
    B = 8           # batch
    E = 16          # input (embedding) size
    H = 32          # hidden size

    key = jax.random.PRNGKey(0)
    kx, kc, kh, ku, kbu, kw, kbw = jax.random.split(key, 7)

    # Deterministic parameter init matching reset_parameters(): U(-stdv, stdv).
    stdv = 1.0 / jnp.sqrt(jnp.float32(H))
    U_input = jax.random.uniform(ku, (E, 4 * H), jnp.float32, -stdv, stdv)
    BU_input = jax.random.uniform(kbu, (4 * H,), jnp.float32, -stdv, stdv)
    W_hidden = jax.random.uniform(kw, (H, 4 * H), jnp.float32, -stdv, stdv)
    BW_hidden = jax.random.uniform(kbw, (4 * H,), jnp.float32, -stdv, stdv)

    inp = jax.random.normal(kx, (B, E), jnp.float32)
    cell_state = jax.random.normal(kc, (B, H), jnp.float32)
    hidden_state = jax.random.normal(kh, (B, H), jnp.float32)

    c_ref, h_ref = reference_lstm_cell(inp, cell_state, hidden_state,
                                       U_input, BU_input, W_hidden, BW_hidden)

    # f32 MXU operands (default, tight check — v5e-friendly).
    c_out, h_out = lstm_cell(inp, cell_state, hidden_state,
                             U_input, BU_input, W_hidden, BW_hidden)
    jax.block_until_ready((c_out, h_out))
    assert jnp.allclose(c_out, c_ref, atol=1e-5, rtol=1e-5)
    assert jnp.allclose(h_out, h_ref, atol=1e-5, rtol=1e-5)

    # bf16 MXU operands with f32 accumulation (v6e/v7x fast path).
    c_bf, h_bf = lstm_cell(inp, cell_state, hidden_state,
                           U_input, BU_input, W_hidden, BW_hidden,
                           mxu_dtype=jnp.bfloat16)
    jax.block_until_ready((c_bf, h_bf))
    assert jnp.allclose(c_bf, c_ref, atol=5e-2, rtol=5e-2)
    assert jnp.allclose(h_bf, h_ref, atol=5e-2, rtol=5e-2)

    print("KERNEL_OK")
</pallas_src>

<mosaic_0001>
module attributes {stable_mosaic.version = 11 : i64} {
  func.func @_lstm_cell_kernel(%arg0: i32, %arg1: i32, %arg2: memref<8x48xf32, #tpu.memory_space<vmem>>, %arg3: memref<8x128xf32, #tpu.memory_space<vmem>>, %arg4: memref<4x48x128xf32, #tpu.memory_space<vmem>>, %arg5: memref<4x1x128xf32, #tpu.memory_space<vmem>>, %arg6: memref<8x128xf32, #tpu.memory_space<vmem>>, %arg7: memref<8x128xf32, #tpu.memory_space<vmem>>) attributes {dimension_semantics = [#tpu.dimension_semantics<parallel>, #tpu.dimension_semantics<parallel>], iteration_bounds = array<i64: 1, 1>, scalar_prefetch = 0 : i64, scratch_operands = 0 : i64, tpu.core_type = #tpu.core_type<tc>, window_params = [{transform_indices = @transform_0, window_bounds = array<i64: 8, 48>}, {transform_indices = @transform_1, window_bounds = array<i64: 8, 128>}, {transform_indices = @transform_2, window_bounds = array<i64: 4, 48, 128>}, {transform_indices = @transform_3, window_bounds = array<i64: 4, 1, 128>}, {transform_indices = @transform_4, window_bounds = array<i64: 8, 128>}, {transform_indices = @transform_5, window_bounds = array<i64: 8, 128>}]} {
    %c0 = arith.constant 0 : index
    %c0_0 = arith.constant 0 : index
    %0 = vector.load %arg2[%c0, %c0_0] : memref<8x48xf32, #tpu.memory_space<vmem>>, vector<8x48xf32>
    %c0_1 = arith.constant 0 : index
    %c0_2 = arith.constant 0 : index
    %1 = vector.load %arg3[%c0_1, %c0_2] : memref<8x128xf32, #tpu.memory_space<vmem>>, vector<8x128xf32>
    %c0_3 = arith.constant 0 : index
    %c0_4 = arith.constant 0 : index
    %c0_5 = arith.constant 0 : index
    %2 = vector.load %arg4[%c0_3, %c0_4, %c0_5] : memref<4x48x128xf32, #tpu.memory_space<vmem>>, vector<1x48x128xf32>
    %3 = vector.shape_cast %2 : vector<1x48x128xf32> to vector<48x128xf32>
    %cst = arith.constant dense<0.000000e+00> : vector<8x128xf32>
    %4 = tpu.matmul %0, %3, %cst {dimension_numbers = #tpu.dot_dimension_numbers<[1], [0], [0], [1], [0, 0, 1, 1], [], []>} : vector<8x48xf32>, vector<48x128xf32>, vector<8x128xf32> -> vector<8x128xf32>
    %c0_6 = arith.constant 0 : index
    %c0_7 = arith.constant 0 : index
    %c0_8 = arith.constant 0 : index
    %5 = vector.load %arg5[%c0_6, %c0_7, %c0_8] : memref<4x1x128xf32, #tpu.memory_space<vmem>>, vector<1x1x128xf32>
    %6 = vector.shape_cast %5 : vector<1x1x128xf32> to vector<1x128xf32>
    %7 = vector.broadcast %6 : vector<1x128xf32> to vector<8x128xf32>
    %8 = arith.addf %4, %7 : vector<8x128xf32>
    %cst_9 = arith.constant 5.000000e-01 : f32
    %9 = vector.broadcast %cst_9 : f32 to vector<8x128xf32>
    %10 = arith.mulf %9, %8 : vector<8x128xf32>
    %11 = math.tanh %10 : vector<8x128xf32>
    %cst_10 = arith.constant 5.000000e-01 : f32
    %12 = vector.broadcast %cst_10 : f32 to vector<8x128xf32>
    %13 = arith.mulf %12, %11 : vector<8x128xf32>
    %cst_11 = arith.constant 5.000000e-01 : f32
    %14 = vector.broadcast %cst_11 : f32 to vector<8x128xf32>
    %15 = arith.addf %13, %14 : vector<8x128xf32>
    %c1 = arith.constant 1 : index
    %c0_12 = arith.constant 0 : index
    %c0_13 = arith.constant 0 : index
    %16 = vector.load %arg4[%c1, %c0_12, %c0_13] : memref<4x48x128xf32, #tpu.memory_space<vmem>>, vector<1x48x128xf32>
    %17 = vector.shape_cast %16 : vector<1x48x128xf32> to vector<48x128xf32>
    %cst_14 = arith.constant dense<0.000000e+00> : vector<8x128xf32>
    %18 = tpu.matmul %0, %17, %cst_14 {dimension_numbers = #tpu.dot_dimension_numbers<[1], [0], [0], [1], [0, 0, 1, 1], [], []>} : vector<8x48xf32>, vector<48x128xf32>, vector<8x128xf32> -> vector<8x128xf32>
    %c1_15 = arith.constant 1 : index
    %c0_16 = arith.constant 0 : index
    %c0_17 = arith.constant 0 : index
    %19 = vector.load %arg5[%c1_15, %c0_16, %c0_17] : memref<4x1x128xf32, #tpu.memory_space<vmem>>, vector<1x1x128xf32>
    %20 = vector.shape_cast %19 : vector<1x1x128xf32> to vector<1x128xf32>
    %21 = vector.broadcast %20 : vector<1x128xf32> to vector<8x128xf32>
    %22 = arith.addf %18, %21 : vector<8x128xf32>
    %cst_18 = arith.constant 5.000000e-01 : f32
    %23 = vector.broadcast %cst_18 : f32 to vector<8x128xf32>
    %24 = arith.mulf %23, %22 : vector<8x128xf32>
    %25 = math.tanh %24 : vector<8x128xf32>
    %cst_19 = arith.constant 5.000000e-01 : f32
    %26 = vector.broadcast %cst_19 : f32 to vector<8x128xf32>
    %27 = arith.mulf %26, %25 : vector<8x128xf32>
    %cst_20 = arith.constant 5.000000e-01 : f32
    %28 = vector.broadcast %cst_20 : f32 to vector<8x128xf32>
    %29 = arith.addf %27, %28 : vector<8x128xf32>
    %c2 = arith.constant 2 : index
    %c0_21 = arith.constant 0 : index
    %c0_22 = arith.constant 0 : index
    %30 = vector.load %arg4[%c2, %c0_21, %c0_22] : memref<4x48x128xf32, #tpu.memory_space<vmem>>, vector<1x48x128xf32>
    %31 = vector.shape_cast %30 : vector<1x48x128xf32> to vector<48x128xf32>
    %cst_23 = arith.constant dense<0.000000e+00> : vector<8x128xf32>
    %32 = tpu.matmul %0, %31, %cst_23 {dimension_numbers = #tpu.dot_dimension_numbers<[1], [0], [0], [1], [0, 0, 1, 1], [], []>} : vector<8x48xf32>, vector<48x128xf32>, vector<8x128xf32> -> vector<8x128xf32>
    %c2_24 = arith.constant 2 : index
    %c0_25 = arith.constant 0 : index
    %c0_26 = arith.constant 0 : index
    %33 = vector.load %arg5[%c2_24, %c0_25, %c0_26] : memref<4x1x128xf32, #tpu.memory_space<vmem>>, vector<1x1x128xf32>
    %34 = vector.shape_cast %33 : vector<1x1x128xf32> to vector<1x128xf32>
    %35 = vector.broadcast %34 : vector<1x128xf32> to vector<8x128xf32>
    %36 = arith.addf %32, %35 : vector<8x128xf32>
    %37 = math.tanh %36 : vector<8x128xf32>
    %c3 = arith.constant 3 : index
    %c0_27 = arith.constant 0 : index
    %c0_28 = arith.constant 0 : index
    %38 = vector.load %arg4[%c3, %c0_27, %c0_28] : memref<4x48x128xf32, #tpu.memory_space<vmem>>, vector<1x48x128xf32>
    %39 = vector.shape_cast %38 : vector<1x48x128xf32> to vector<48x128xf32>
    %cst_29 = arith.constant dense<0.000000e+00> : vector<8x128xf32>
    %40 = tpu.matmul %0, %39, %cst_29 {dimension_numbers = #tpu.dot_dimension_numbers<[1], [0], [0], [1], [0, 0, 1, 1], [], []>} : vector<8x48xf32>, vector<48x128xf32>, vector<8x128xf32> -> vector<8x128xf32>
    %c3_30 = arith.constant 3 : index
    %c0_31 = arith.constant 0 : index
    %c0_32 = arith.constant 0 : index
    %41 = vector.load %arg5[%c3_30, %c0_31, %c0_32] : memref<4x1x128xf32, #tpu.memory_space<vmem>>, vector<1x1x128xf32>
    %42 = vector.shape_cast %41 : vector<1x1x128xf32> to vector<1x128xf32>
    %43 = vector.broadcast %42 : vector<1x128xf32> to vector<8x128xf32>
    %44 = arith.addf %40, %43 : vector<8x128xf32>
    %cst_33 = arith.constant 5.000000e-01 : f32
    %45 = vector.broadcast %cst_33 : f32 to vector<8x128xf32>
    %46 = arith.mulf %45, %44 : vector<8x128xf32>
    %47 = math.tanh %46 : vector<8x128xf32>
    %cst_34 = arith.constant 5.000000e-01 : f32
    %48 = vector.broadcast %cst_34 : f32 to vector<8x128xf32>
    %49 = arith.mulf %48, %47 : vector<8x128xf32>
    %cst_35 = arith.constant 5.000000e-01 : f32
    %50 = vector.broadcast %cst_35 : f32 to vector<8x128xf32>
    %51 = arith.addf %49, %50 : vector<8x128xf32>
    %52 = arith.mulf %1, %15 : vector<8x128xf32>
    %53 = arith.mulf %29, %37 : vector<8x128xf32>
    %54 = arith.addf %52, %53 : vector<8x128xf32>
    %c0_36 = arith.constant 0 : index
    %c0_37 = arith.constant 0 : index
    %55 = vector.load %arg6[%c0_36, %c0_37] : memref<8x128xf32, #tpu.memory_space<vmem>>, vector<8x128xf32>
    tpu.vector_store %arg6[%c0_36, %c0_37], %54 {strides = array<i32>} : memref<8x128xf32, #tpu.memory_space<vmem>>, vector<8x128xf32>,
    %56 = math.tanh %54 : vector<8x128xf32>
    %57 = arith.mulf %51, %56 : vector<8x128xf32>
    %c0_38 = arith.constant 0 : index
    %c0_39 = arith.constant 0 : index
    %58 = vector.load %arg7[%c0_38, %c0_39] : memref<8x128xf32, #tpu.memory_space<vmem>>, vector<8x128xf32>
    tpu.vector_store %arg7[%c0_38, %c0_39], %57 {strides = array<i32>} : memref<8x128xf32, #tpu.memory_space<vmem>>, vector<8x128xf32>,
    return
  }
  func.func @transform_0(%arg0: i32, %arg1: i32) -> (i32, i32) {
    %c0_i32 = arith.constant 0 : i32
    %c0_i32_0 = arith.constant 0 : i32
    return %arg0, %c0_i32 : i32, i32
  }
  func.func @transform_1(%arg0: i32, %arg1: i32) -> (i32, i32) {
    %c0_i32 = arith.constant 0 : i32
    return %arg0, %arg1 : i32, i32
  }
  func.func @transform_2(%arg0: i32, %arg1: i32) -> (i32, i32, i32) {
    %c0_i32 = arith.constant 0 : i32
    %c0_i32_0 = arith.constant 0 : i32
    %c0_i32_1 = arith.constant 0 : i32
    return %c0_i32, %c0_i32_0, %arg1 : i32, i32, i32
  }
  func.func @transform_3(%arg0: i32, %arg1: i32) -> (i32, i32, i32) {
    %c0_i32 = arith.constant 0 : i32
    %c0_i32_0 = arith.constant 0 : i32
    %c0_i32_1 = arith.constant 0 : i32
    return %c0_i32, %c0_i32_0, %arg1 : i32, i32, i32
  }
  func.func @transform_4(%arg0: i32, %arg1: i32) -> (i32, i32) {
    %c0_i32 = arith.constant 0 : i32
    return %arg0, %arg1 : i32, i32
  }
  func.func @transform_5(%arg0: i32, %arg1: i32) -> (i32, i32) {
    %c0_i32 = arith.constant 0 : i32
    return %arg0, %arg1 : i32, i32
  }
}

</mosaic_0001>

<bundles_post_ra>
// kernel: lstm_cell.1
= control target key start
LH: loop header
LB: loop body
LE: loop exit
PB: predicated region body
PF: predicated region fallthrough
CT: control target
= control target key end

     0   :  { %v593_v3 = vmov 0.0|0.0   ;;  %vm594_vm0 = vmmov 0   ;;  %v595_v10 = vmov 0.0   ;;  %s752_s0 = inlined_call_operand.vmem [shape: f32[8,48], index: 0, kind: input, shape index: {}]   ;;  %s753_s1 = inlined_call_operand.vmem [shape: f32[8,128], index: 1, kind: input, shape index: {}, may-alias: {1,4}]   ;;  %s754_s2 = inlined_call_operand.vmem [shape: f32[4,48,128], index: 2, kind: input, shape index: {}]   ;;  %s755_s3 = inlined_call_operand.vmem [shape: f32[4,1,128], index: 3, kind: input, shape index: {}]   ;;  %s756_s4 = inlined_call_operand.vmem [shape: f32[8,128], index: 4, kind: output, shape index: {0}, may-alias: {1,4}]   ;;  %s757_s5 = inlined_call_operand.hbm [shape: f32[8,128], index: 5, kind: output, shape index: {1}]  }
   0x1   :  { %v22_v0 = vld [vmem:[%s754_s2] sm:$0xff]  ;;  %v23_v1 = vld [vmem:[%s754_s2 + $0x8] sm:$0xff]  ;;  %v24_v2 = vld [vmem:[%s754_s2 + $0x10] sm:$0xff]  ;;  %519 = vmatprep.subr.bf16.mxu0 %v593_v3  ;;  %528 = vmatprep.subr.bf16.mxu1 %v593_v3 }
   0x2   :  { %v520_v4 = vpack.c.bf16 %v23_v1, %v22_v0  ;;  %v25_v5 = vld [vmem:[%s754_s2 + $0x18] sm:$0xff]  ;;  %v404_v6 = vld [vmem:[%s754_s2 + $0x30] sm:$0xff]  ;;  %v406_v9 = vld [vmem:[%s754_s2 + $0x40] sm:$0xff]  ;;  %471 = vmatprep.mubr.msk.f32.mxu0 %vm594_vm0, %v595_v10  ;;  %486 = vmatprep.mubr.msk.f32.mxu1 %vm594_vm0, %v595_v10 }
   0x3   :  { %v405_v7 = vld [vmem:[%s754_s2 + $0x38] sm:$0xff]  ;;  %v523_v11 = vpack.c.bf16 %v25_v5, %v24_v2  ;;  %v407_v12 = vld [vmem:[%s754_s2 + $0x48] sm:$0xff]  ;;  %v26_v13 = vld [vmem:[%s754_s2 + $0x20] sm:$0xff] }
   0x4   :  { %v529_v8 = vpack.c.bf16 %v405_v7, %v404_v6  ;;  %521 = vmatpush3.bf16.msra.mxu0 %v520_v4  ;;  %v27_v14 = vld [vmem:[%s754_s2 + $0x28] sm:$0xff]  ;;  %v532_v15 = vpack.c.bf16 %v407_v12, %v406_v9  ;;  %v408_v16 = vld [vmem:[%s754_s2 + $0x50] sm:$0xff]  ;;  %v409_v17 = vld [vmem:[%s754_s2 + $0x58] sm:$0xff] }
   0x5   :  { %522 = vmatprep.subr.bf16.mxu0 %v593_v3  ;;  %v526_v18 = vpack.c.bf16 %v27_v14, %v26_v13  ;;  %v413_v19 = vld [vmem:[%s754_s2 + $0x60] sm:$0xff]  ;;  %v414_v20 = vld [vmem:[%s754_s2 + $0x68] sm:$0xff]  ;;  %v535_v21 = vpack.c.bf16 %v409_v17, %v408_v16  ;;  %v422_v22 = vld [vmem:[%s754_s2 + $0x90] sm:$0xff] }
   0x6   :  { %530 = vmatpush3.bf16.msra.mxu1 %v529_v8  ;;  %v423_v23 = vld [vmem:[%s754_s2 + $0x98] sm:$0xff] }
   0x7   :  { %531 = vmatprep.subr.bf16.mxu1 %v593_v3 }
   0x8   :  { %524 = vmatpush3.bf16.msra.mxu0 %v523_v11 }
   0x9   :  { %525 = vmatprep.subr.bf16.mxu0 %v593_v3 }
   0xa   :  { %533 = vmatpush3.bf16.msra.mxu1 %v532_v15 }
   0xb   :  { %534 = vmatprep.subr.bf16.mxu1 %v593_v3 }
   0xc   :  { %11 = vsyncpa [#allocation3], 0  ;;  %527 = vmatpush3.bf16.msra.mxu0 %v526_v18  ;;  %v20_v24 = vld [vmem:[%s752_s0] sm:$0xff]  ;;  %vm35_vm1 = vcmask 392192   ;;  %v538_v25 = vpack.c.bf16 %v414_v20, %v413_v19  ;;  %v415_v26 = vld [vmem:[%s754_s2 + $0x70] sm:$0xff]  ;;  %v547_v28 = vpack.c.bf16 %v423_v23, %v422_v22  ;;  %s596_s27 = smov [#allocation2]  }
   0xd   :  { %537 = vmatprep.subr.bf16.mxu0 %v593_v3  ;;  %v416_v27 = vld [vmem:[%s754_s2 + $0x78] sm:$0xff]  ;;  %v424_v29 = vld [vmem:[%s754_s2 + $0xa0] sm:$0xff]  ;;  %v425_v30 = vld [vmem:[%s754_s2 + $0xa8] sm:$0xff]  ;;  %s392_s28 = sshll.u32 %s596_s27, 4  ;;  %s393_s28 = int_to_ptr.vmem [resolvable:$true] %s392_s28 }
   0xe   :  { %536 = vmatpush3.bf16.msra.mxu1 %v535_v21  ;;  %v541_v31 = vpack.c.bf16 %v416_v27, %v415_v26  ;;  %v417_v32 = vld [vmem:[%s754_s2 + $0x80] sm:$0xff]  ;;  %v418_v33 = vld [vmem:[%s754_s2 + $0x88] sm:$0xff]  ;;  %v550_v34 = vpack.c.bf16 %v425_v30, %v424_v29  ;;  %v426_v35 = vld [vmem:[%s754_s2 + $0xb0] sm:$0xff]  ;;  %s569_s29 = scalar_lea.vmem %s393_s28, 128  ;;  %p574_p1 = scmp.lt.s32.totalorder %s393_s28, %s393_s28 }
   0xf   :  { %546 = vmatprep.subr.bf16.mxu1 %v593_v3  ;;  %472 = vmatmul.mubr.msk.f32.vlgmr.msra.gmra.mrb[0].mxu0 %vm35_vm1, %v20_v24  ;;  %v427_v36 = vld [vmem:[%s754_s2 + $0xb8] sm:$0xff]  ;;  %v544_v37 = vpack.c.bf16 %v418_v33, %v417_v32  ;;  %v402_v39 = vld [vmem:[%s755_s3] ss:$0 sm:$0xff]  ;;  %v411_v40 = vld [vmem:[%s755_s3 + $0x1] ss:$0 sm:$0xff]  ;;  %p570_p0 = scmp.ne.s32.totalorder %s393_s28, %s569_s29  ;;  %p575_p2 = scmp.lt.s32.totalorder %s569_s29, %s569_s29 }
  0x10   :  { %539 = vmatpush3.bf16.msra.mxu0 %v538_v25  ;;  %501 = vmatprep.mubr.msk.f32.mxu0 %vm594_vm0, %v595_v10  ;;  %v553_v38 = vpack.c.bf16 %v427_v36, %v426_v35  ;;  %v420_v49 = vld [vmem:[%s755_s3 + $0x2] ss:$0 sm:$0xff]  ;;  %v429_v50 = vld [vmem:[%s755_s3 + $0x3] ss:$0 sm:$0xff] }
  0x11   :  { %487 = vmatmul.mubr.msk.f32.vlgmr.msra.gmra.mrb[0].mxu1 %vm35_vm1, %v20_v24  ;;  %540 = vmatprep.subr.bf16.mxu0 %v593_v3  ;;  %v21_v0 = vld [vmem:[%s753_s1] sm:$0xff]  ;;  %p576_p3 = por %p575_p2, %p574_p1 }
  0x12   :  { %548 = vmatpush3.bf16.msra.mxu1 %v547_v28  ;;  %516 = vmatprep.mubr.msk.f32.mxu1 %vm594_vm0, %v595_v10 }
  0x13   :  { %549 = vmatprep.subr.bf16.mxu1 %v593_v3  ;;  %p577_p4 = pnand %p576_p3, %p570_p0 }
  0x14   :  { %542 = vmatpush3.bf16.msra.mxu0 %v541_v31 }
  0x15   :  { %543 = vmatprep.subr.bf16.mxu0 %v593_v3 }
  0x16   :  { %551 = vmatpush3.bf16.msra.mxu1 %v550_v34 }
  0x17   :  { %552 = vmatprep.subr.bf16.mxu1 %v593_v3 }
  0x18   :  { %545 = vmatpush3.bf16.msra.mxu0 %v544_v37 }
  0x1a   :  { %554 = vmatpush3.bf16.msra.mxu1 %v553_v38 }
  0x1b   :  { %502 = vmatmul.mubr.msk.f32.vlgmr.msra.gmra.mrb[2].mxu0 %vm35_vm1, %v20_v24 }
  0x1d   :  { %517 = vmatmul.mubr.msk.f32.vlgmr.msra.gmra.mrb[2].mxu1 %vm35_vm1, %v20_v24 }
  0xe2   :  { %v105_v41 = vpop.f32.mrb[0].mxu0 }
  0xe3   :  { %v106_v42 = vadd.f32 %v402_v39, %v105_v41  ;;  %v473_v43 = vpop.f32.mrb[1].mxu0 }
  0xe4   :  { %v194_v44 = vpop.f32.mrb[0].mxu1 }
  0xe5   :  { %v195_v45 = vadd.f32 %v411_v40, %v194_v44  ;;  %v488_v46 = vpop.f32.mrb[1].mxu1  ;;  %v109_v47 = vmul.f32 0.5, %v106_v42 }
  0xe7   :  { %v198_v48 = vmul.f32 0.5, %v195_v45  ;;  %559 = vtanh.f32 %v109_v47 }
  0xe9   :  { %561 = vtanh.f32 %v198_v48 }
  0xee   :  { %v283_v51 = vpop.f32.mrb[2].mxu0 }
  0xef   :  { %v284_v52 = vadd.f32 %v420_v49, %v283_v51  ;;  %v503_v53 = vpop.f32.mrb[3].mxu0 }
  0xf0   :  { %v369_v54 = vpop.f32.mrb[2].mxu1 }
  0xf1   :  { %v370_v55 = vadd.f32 %v429_v50, %v369_v54  ;;  %v518_v56 = vpop.f32.mrb[3].mxu1  ;;  %v560_v57 = vpop.eup %559  ;;  %563 = vtanh.f32 %v284_v52 }
  0xf2   :  { %v111_v60 = vmul.f32 0.5, %v560_v57 }
  0xf3   :  { %v562_v58 = vpop.eup %561  ;;  %v373_v59 = vmul.f32 0.5, %v370_v55 }
  0xf4   :  { %v200_v61 = vmul.f32 0.5, %v562_v58  ;;  %v112_v62 = vadd.f32 0.5, %v111_v60 }
  0xf5   :  { %565 = vtanh.f32 %v373_v59 }
  0xf6   :  { %v201_v63 = vadd.f32 0.5, %v200_v61  ;;  %v377_v2 = vmul.f32 %v112_v62, %v21_v0 }
  0xfb   :  { %v564_v1 = vpop.eup %563 }
  0xfc   :  { %v378_v3 = vmul.f32 %v564_v1, %v201_v63 }
  0xfe   :  { %v379_v4 = vadd.f32 %v378_v3, %v377_v2 }
  0xff   :  { %v566_v5 = vpop.eup %565 }
 0x100   :  { %380 = vst [vmem:[%s756_s4] sm:$0xff] %v379_v4  ;;  %567 = vtanh.f32 %v379_v4  ;;  %v375_v6 = vmul.f32 0.5, %v566_v5 }
 0x102   :  { %v376_v7 = vadd.f32 0.5, %v375_v6 }
 0x10a   :  { %v568_v8 = vpop.eup %567 }
 0x10b   :  { %v382_v9 = vmul.f32 %v568_v8, %v376_v7 }
 0x10d   :  { %383 = vst [vmem:[#allocation2] sm:$0xff] %v382_v9 }
 0x10e   :  { %580 = shalt.err (!%p577_p4)
}
 0x10f   :  { %s581_s4 = scalar_lea.hbm %s757_s5, 128 }
 0x110   :  { %p582_p5 = scmp.ne.s32.totalorder %s757_s5, %s581_s4  ;;  %p585_p6 = scmp.lt.u32.totalorder %s581_s4, %s757_s5 }
 0x112   :  { %p587_p7 = pnand %p585_p6, %p582_p5 }
 0x114   :  { %590 = shalt.err (!%p587_p7)
}
 0x115   :  { %395 = dma.vmem_to_hbm [thread:$0]  %s393_s28, 128, %s757_s5, [#allocation3]  }
 0x116   :  { %591 = dma.done.wait [#allocation3], 128  }
 0x117   :  { %592 = vsyncadd [#allocation3], 4294967168 }
 0x118   :  { %401 = vsyncpa [#allocation3], 1 }

</bundles_post_ra>
